<compile_context>
chip_gen: v7x
topology: tpu7x:2x2x1
jax: 0.10.0
libtpu: 0.0.40
codegen_flags: <defaults>
</compile_context>

<pallas_src>
import jax
import jax.numpy as jnp
from jax.experimental import pallas as pl
from jax.experimental.pallas import tpu as pltpu

P_PAD = 8  # process axis padded to one full f32 sublane group


def _process_mask_kernel(x_ref, w_ref, b_ref, mask_ref, o_ref):
    """One N-tile of the fused linear + double-softmax + residual t=0.5 softmax.

    x_ref:    (TILE_N, D)  encoder rows for this tile (f32 or bf16)
    w_ref:    (P_PAD, D)   linear weight, rows >= P zero-padded (resident, x dtype)
    b_ref:    (P_PAD, 1)   linear bias,   rows >= P zero-padded (resident, f32)
    mask_ref: (P, TILE_N)  process_mask slab, N on the 128-lane axis
    o_ref:    (P, TILE_N)  output slab (lane-dense stores, f32)
    """
    p = mask_ref.shape[0]

    # logits^T : (P_PAD, TILE_N) = W_pad @ X^T + b.
    # Contracting on the last dim of both operands (trans-rhs matmul) makes the
    # MXU emit the result directly in the lane-dense (process, N) orientation,
    # so no (TILE_N, P) -> (P, TILE_N) relayout of the big tile is needed.
    # bf16 operands accumulate in f32; everything below stays f32.
    logits_t = jax.lax.dot_general(
        w_ref[...], x_ref[...],
        dimension_numbers=(((1,), (1,)), ((), ())),
        preferred_element_type=jnp.float32,
    ) + b_ref[...]

    # Drop the zero-padded process rows; every reduction below then runs over
    # exactly the P valid rows (sublane axis) with N on the lane axis.
    logits_t = logits_t[:p, :]

    # softmax #1 over the process axis (stable; == nn.Softmax(dim=-1)).
    m1 = jnp.max(logits_t, axis=0, keepdims=True)
    e1 = jnp.exp(logits_t - m1)
    p1 = e1 * pl.reciprocal(jnp.sum(e1, axis=0, keepdims=True), approx=True)

    # softmax #2 (torch.softmax(..., dim=-1)).  p1 is in (0, 1], so exp cannot
    # overflow and the max-subtraction is dropped on purpose (numerically
    # equivalent; keep this invariant in mind if softmax #1 ever changes).
    e2 = jnp.exp(p1)
    p2 = e2 * pl.reciprocal(jnp.sum(e2, axis=0, keepdims=True), approx=True)

    # Residual add + the module's hand-rolled softmax(dim=process, t=0.5),
    # intentionally WITHOUT max subtraction (faithful to the PyTorch code: very
    # large positive mask values overflow exactly like torch f32 would).
    # Final normalization uses an exact divide (free: kernel is HBM-bound).
    ex = jnp.exp((p2 + mask_ref[...].astype(jnp.float32)) * 2.0)   # resid / 0.5
    o_ref[...] = ex / jnp.sum(ex, axis=0, keepdims=True)


def process_mask_predictor(enc_output_in, process_mask, weight, bias, *,
                           tile_n=8192):
    """enc_output_in: (B, S, D) f32/bf16; process_mask: (P, B, S) f32/bf16;
    weight: (P, D) (torch nn.Linear layout); bias: (P,). Returns (P, B, S) f32."""
    B, S, D = enc_output_in.shape
    P = weight.shape[0]
    N = B * S

    # Lane-dense layouts come straight from reshapes (no HBM transposes):
    #   x    (N, D): rows of the encoder output
    #   mask (P, N): (P, B, S) is already (P, N) row-major
    # The kernel also emits (P, N), so the final (P, B, S) is a free reshape.
    # Streamed operands keep the producer's dtype (bf16 halves the dominant
    # HBM stream); no forced f32 astype copies.
    x = enc_output_in.reshape(N, D)
    mask = process_mask.reshape(P, N)
    if x.dtype != jnp.bfloat16 and x.dtype != jnp.float32:
        x = x.astype(jnp.float32)
    if mask.dtype != jnp.bfloat16 and mask.dtype != jnp.float32:
        mask = mask.astype(jnp.float32)

    # Tiny resident params: W matches x's dtype for a native MXU matmul (f32
    # accumulation); bias stays f32 (added post-matmul).  Pad the process axis
    # to 8 rows so the MXU result tile is sublane-aligned (padded rows are
    # sliced off in-kernel before any reduction).
    w_pd = jnp.zeros((P_PAD, D), x.dtype).at[:P].set(weight.astype(x.dtype))
    b_pd = jnp.zeros((P_PAD, 1), jnp.float32).at[:P, 0].set(bias.astype(jnp.float32))

    # Tile over N (no padding / slicing: Pallas bounds the partial last block).
    # For the multi-tile case, round the tile count up to an even number so the
    # "parallel" grid splits evenly across the two TensorCores on v7x, and the
    # tile width up to a 128-lane multiple for the (8,128) block rule.
    if N <= tile_n:
        tile_n = N                       # single block == full arrays
    else:
        num_tiles = pl.cdiv(N, tile_n)
        if num_tiles % 2 == 1:
            num_tiles += 1               # even split across 2 TCs (v7x megacore)
        tile_n = ((pl.cdiv(N, num_tiles) + 127) // 128) * 128
    grid = (pl.cdiv(N, tile_n),)

    out = pl.pallas_call(
        _process_mask_kernel,
        out_shape=jax.ShapeDtypeStruct((P, N), jnp.float32),
        grid=grid,
        in_specs=[
            pl.BlockSpec((tile_n, D), lambda i: (i, 0)),   # x: streams over N
            pl.BlockSpec((P_PAD, D), lambda i: (0, 0)),    # W: resident
            pl.BlockSpec((P_PAD, 1), lambda i: (0, 0)),    # b: resident
            pl.BlockSpec((P, tile_n), lambda i: (0, i)),   # mask: streams over N
        ],
        out_specs=pl.BlockSpec((P, tile_n), lambda i: (0, i)),
        compiler_params=pltpu.CompilerParams(
            # Independent N tiles: shards across both TensorCores on v7x;
            # measured-neutral on single-TC v5e/v6e.
            dimension_semantics=("parallel",),
            # x block is lane-padded to 128 lanes (4 MiB/buffer at tile_n=8192,
            # f32); ~12 MiB total with double buffering + temporaries, above
            # v5e's 16 MiB scoped default -> give explicit headroom.
            vmem_limit_bytes=32 * 1024 * 1024,
        ),
    )(x, w_pd, b_pd, mask)

    return out.reshape(P, B, S)


def _reference(enc_output_in, process_mask, weight, bias):
    """Pure-JAX reference mirroring the PyTorch forward (f32 throughout)."""
    logits = jnp.einsum("bsd,pd->bsp", enc_output_in, weight) + bias
    p1 = jax.nn.softmax(logits, axis=-1)
    p2 = jax.nn.softmax(p1, axis=-1)
    resid = jnp.transpose(p2, (2, 0, 1)) + process_mask
    ex = jnp.exp(resid / 0.5)
    return ex / jnp.sum(ex, axis=0)


if __name__ == "__main__":
    key = jax.random.PRNGKey(0)

    def run_case(case_id, B, S, D, P, *, dtype=jnp.float32, tile_n=8192, tol=2e-3):
        k_enc, k_mask, k_w, k_b = jax.random.split(jax.random.fold_in(key, case_id), 4)
        enc = jax.random.normal(k_enc, (B, S, D), dtype=jnp.float32)
        mask = jax.random.normal(k_mask, (P, B, S), dtype=jnp.float32)
        weight = jax.random.normal(k_w, (P, D), dtype=jnp.float32) * (1.0 / jnp.sqrt(D))
        bias = jax.random.normal(k_b, (P,), dtype=jnp.float32) * 0.01

        out = jax.block_until_ready(
            process_mask_predictor(enc.astype(dtype), mask.astype(dtype),
                                   weight, bias, tile_n=tile_n))
        ref = _reference(enc.astype(dtype).astype(jnp.float32),
                         mask.astype(dtype).astype(jnp.float32), weight, bias)
        assert out.shape == (P, B, S), out.shape
        assert out.dtype == jnp.float32, out.dtype
        err = float(jnp.max(jnp.abs(out - ref)))
        # f32 tolerance covers the two approx=True EUP reciprocals used for the
        # intermediate softmax normalizations (final divide is exact).
        assert err < tol, (case_id, err)

    # Small shapes consistent with the module (batch=2, seq=8, d_model=32, P=4):
    # single-block path (tile_n == N).
    run_case(0, B=2, S=8, D=32, P=4)
    # Multi-tile path with even-ized grid and a bounded partial last block:
    # N=2600, cap 1024 -> 4 tiles of width 768, last block covers 296 columns.
    run_case(1, B=4, S=650, D=32, P=4, tile_n=1024)
    # bf16 streaming of the dominant operands (bf16 MXU matmul, f32 accumulate,
    # all softmax math in f32); looser tolerance covers the bf16 input rounding.
    run_case(2, B=4, S=640, D=32, P=4, dtype=jnp.bfloat16, tile_n=1024, tol=6e-2)

    print("KERNEL_OK")
</pallas_src>

<mosaic_0001>
module attributes {stable_mosaic.version = 11 : i64} {
  func.func @_process_mask_kernel(%arg0: i32, %arg1: memref<16x32xf32, #tpu.memory_space<vmem>>, %arg2: memref<8x32xf32, #tpu.memory_space<vmem>>, %arg3: memref<8x1xf32, #tpu.memory_space<vmem>>, %arg4: memref<4x16xf32, #tpu.memory_space<vmem>>, %arg5: memref<4x16xf32, #tpu.memory_space<vmem>>) attributes {dimension_semantics = [#tpu.dimension_semantics<parallel>], iteration_bounds = array<i64: 1>, scalar_prefetch = 0 : i64, scratch_operands = 0 : i64, tpu.core_type = #tpu.core_type<tc>, window_params = [{transform_indices = @transform_0, window_bounds = array<i64: 16, 32>}, {pipeline_mode = #tpu.pipeline_mode<synchronous>, transform_indices = @transform_1, window_bounds = array<i64: 8, 32>}, {pipeline_mode = #tpu.pipeline_mode<synchronous>, transform_indices = @transform_2, window_bounds = array<i64: 8, 1>}, {transform_indices = @transform_3, window_bounds = array<i64: 4, 16>}, {transform_indices = @transform_4, window_bounds = array<i64: 4, 16>}]} {
    %c0 = arith.constant 0 : index
    %c0_0 = arith.constant 0 : index
    %0 = vector.load %arg2[%c0, %c0_0] : memref<8x32xf32, #tpu.memory_space<vmem>>, vector<8x32xf32>
    %c0_1 = arith.constant 0 : index
    %c0_2 = arith.constant 0 : index
    %1 = vector.load %arg1[%c0_1, %c0_2] : memref<16x32xf32, #tpu.memory_space<vmem>>, vector<16x32xf32>
    %cst = arith.constant dense<0.000000e+00> : vector<8x16xf32>
    %2 = tpu.matmul %0, %1, %cst {dimension_numbers = #tpu.dot_dimension_numbers<[1], [1], [0], [0], [0, 0, 1, 0], [], []>} : vector<8x32xf32>, vector<16x32xf32>, vector<8x16xf32> -> vector<8x16xf32>
    %c0_3 = arith.constant 0 : index
    %c0_4 = arith.constant 0 : index
    %3 = vector.load %arg3[%c0_3, %c0_4] : memref<8x1xf32, #tpu.memory_space<vmem>>, vector<8x1xf32>
    %4 = vector.broadcast %3 : vector<8x1xf32> to vector<8x16xf32>
    %5 = arith.addf %2, %4 : vector<8x16xf32>
    %6 = vector.extract_strided_slice %5 {offsets = [0, 0], sizes = [4, 16], strides = [1, 1]} : vector<8x16xf32> to vector<4x16xf32>
    %cst_5 = arith.constant dense<0xFF800000> : vector<16xf32>
    %7 = vector.multi_reduction <maximumf>, %6, %cst_5 [0] : vector<4x16xf32> to vector<16xf32>
    %8 = vector.shape_cast %7 : vector<16xf32> to vector<1x16xf32>
    %9 = vector.broadcast %8 : vector<1x16xf32> to vector<4x16xf32>
    %10 = arith.subf %6, %9 : vector<4x16xf32>
    %11 = math.exp %10 : vector<4x16xf32>
    %cst_6 = arith.constant dense<0.000000e+00> : vector<16xf32>
    %12 = vector.multi_reduction <add>, %11, %cst_6 [0] : vector<4x16xf32> to vector<16xf32>
    %13 = vector.shape_cast %12 : vector<16xf32> to vector<1x16xf32>
    %14 = tpu.reciprocal %13 {approx = true} : vector<1x16xf32> -> vector<1x16xf32>
    %15 = vector.broadcast %14 : vector<1x16xf32> to vector<4x16xf32>
    %16 = arith.mulf %11, %15 : vector<4x16xf32>
    %17 = math.exp %16 : vector<4x16xf32>
    %cst_7 = arith.constant dense<0.000000e+00> : vector<16xf32>
    %18 = vector.multi_reduction <add>, %17, %cst_7 [0] : vector<4x16xf32> to vector<16xf32>
    %19 = vector.shape_cast %18 : vector<16xf32> to vector<1x16xf32>
    %20 = tpu.reciprocal %19 {approx = true} : vector<1x16xf32> -> vector<1x16xf32>
    %21 = vector.broadcast %20 : vector<1x16xf32> to vector<4x16xf32>
    %22 = arith.mulf %17, %21 : vector<4x16xf32>
    %c0_8 = arith.constant 0 : index
    %c0_9 = arith.constant 0 : index
    %23 = vector.load %arg4[%c0_8, %c0_9] : memref<4x16xf32, #tpu.memory_space<vmem>>, vector<4x16xf32>
    %24 = arith.addf %22, %23 : vector<4x16xf32>
    %cst_10 = arith.constant 2.000000e+00 : f32
    %25 = vector.broadcast %cst_10 : f32 to vector<4x16xf32>
    %26 = arith.mulf %24, %25 : vector<4x16xf32>
    %27 = math.exp %26 : vector<4x16xf32>
    %cst_11 = arith.constant dense<0.000000e+00> : vector<16xf32>
    %28 = vector.multi_reduction <add>, %27, %cst_11 [0] : vector<4x16xf32> to vector<16xf32>
    %29 = vector.shape_cast %28 : vector<16xf32> to vector<1x16xf32>
    %30 = vector.broadcast %29 : vector<1x16xf32> to vector<4x16xf32>
    %31 = arith.divf %27, %30 : vector<4x16xf32>
    %c0_12 = arith.constant 0 : index
    %c0_13 = arith.constant 0 : index
    %32 = vector.load %arg5[%c0_12, %c0_13] : memref<4x16xf32, #tpu.memory_space<vmem>>, vector<4x16xf32>
    tpu.vector_store %arg5[%c0_12, %c0_13], %31 {strides = array<i32>} : memref<4x16xf32, #tpu.memory_space<vmem>>, vector<4x16xf32>,
    return
  }
  func.func @transform_0(%arg0: i32) -> (i32, i32) {
    %c0_i32 = arith.constant 0 : i32
    %c0_i32_0 = arith.constant 0 : i32
    return %arg0, %c0_i32 : i32, i32
  }
  func.func @transform_1(%arg0: i32) -> (i32, i32) {
    %c0_i32 = arith.constant 0 : i32
    %c0_i32_0 = arith.constant 0 : i32
    %c0_i32_1 = arith.constant 0 : i32
    return %c0_i32, %c0_i32_0 : i32, i32
  }
  func.func @transform_2(%arg0: i32) -> (i32, i32) {
    %c0_i32 = arith.constant 0 : i32
    %c0_i32_0 = arith.constant 0 : i32
    %c0_i32_1 = arith.constant 0 : i32
    return %c0_i32, %c0_i32_0 : i32, i32
  }
  func.func @transform_3(%arg0: i32) -> (i32, i32) {
    %c0_i32 = arith.constant 0 : i32
    %c0_i32_0 = arith.constant 0 : i32
    return %c0_i32, %arg0 : i32, i32
  }
  func.func @transform_4(%arg0: i32) -> (i32, i32) {
    %c0_i32 = arith.constant 0 : i32
    %c0_i32_0 = arith.constant 0 : i32
    return %c0_i32, %arg0 : i32, i32
  }
}

</mosaic_0001>

<bundles_post_ra>
// kernel: tpu_custom_call.1
= control target key start
LH: loop header
LB: loop body
LE: loop exit
PB: predicated region body
PF: predicated region fallthrough
CT: control target
= control target key end

     0   :  { %9 = vsyncpa [#allocation3], 0  ;;  %s339_s0 = inlined_call_operand.hbm [shape: f32[16,32], index: 0, kind: input, shape index: {}]   ;;  %s340_s1 = inlined_call_operand.vmem [shape: f32[8,32], index: 1, kind: input, shape index: {}]   ;;  %s341_s2 = inlined_call_operand.vmem [shape: f32[8,1], index: 2, kind: input, shape index: {}]   ;;  %s342_s3 = inlined_call_operand.vmem [shape: f32[4,16], index: 3, kind: input, shape index: {}]   ;;  %s343_s4 = inlined_call_operand.hbm [shape: f32[4,16], index: 4, kind: output, shape index: {}]  }
   0x1   :  { %10 = vsyncpa [#allocation4], 0  ;;  %s268_s15 = smov [#allocation2]   ;;  %s220_s19 = scalar_lea.hbm %s339_s0, 256 }
   0x2   :  { %s16_s16 = sshll.u32 %s268_s15, 4  ;;  %p221_p0 = scmp.ne.s32.totalorder %s339_s0, %s220_s19  ;;  %s17_s16 = int_to_ptr.vmem [resolvable:$true] %s16_s16 }
   0x3   :  { %p224_p1 = scmp.lt.u32.totalorder %s220_s19, %s339_s0 }
   0x5   :  { %p226_p2 = pnand %p224_p1, %p221_p0 }
   0x7   :  { %229 = shalt.err (!%p226_p2)
}
   0x8   :  { %s230_s24 = scalar_lea.vmem %s17_s16, 256  ;;  %p235_p4 = scmp.lt.s32.totalorder %s17_s16, %s17_s16 }
   0x9   :  { %p231_p3 = scmp.ne.s32.totalorder %s17_s16, %s230_s24  ;;  %p236_p5 = scmp.lt.s32.totalorder %s230_s24, %s230_s24 }
   0xb   :  { %p237_p6 = por %p236_p5, %p235_p4 }
   0xd   :  { %p238_p7 = pnand %p237_p6, %p231_p3 }
   0xf   :  { %241 = shalt.err (!%p238_p7)
}
  0x10   :  { %s269_s25 = smov 128   ;;  %s270_s26 = smov 8  }
  0x11   :  { %22 = dma.hbm_to_vmem [thread:$0]  %s339_s0, 256, %s17_s16, [#allocation3], %s269_s25, %s269_s25, %s270_s26  }
  0x12   :  { %264 = dma.done.wait [#allocation3], 256  }
  0x13   :  { %265 = vsyncadd [#allocation3], 4294967040  ;;  %v271_v0 = vmov 0.0|0.0   ;;  %vm272_vm0 = vmmov 0   ;;  %v273_v1 = vmov 0.0   ;;  %v274_v2 = vmov 0  }
  0x14   :  { %195 = vmatprep.subr.bf16.mxu0 %v271_v0  ;;  %192 = vmatprep.mubr.msk.f32.mxu0 %vm272_vm0, %v273_v1  ;;  %vm41_vm1 = vcmask 261120   ;;  %v33_v3 = vld [vmem:[#allocation2] sm:$0xff]  ;;  %v34_v4 = vld [vmem:[#allocation2 + $0x8] sm:$0xff]  ;;  %vm121_vm3 = vcmask 125952   ;;  %s275_s6 = smov [#allocation5]  }
  0x15   :  { %207 = vset.pattern.permute.xlu0 %v274_v2  ;;  %vm197_vm2 = vmpackc.low %vm41_vm1, %vm41_vm1  ;;  %v196_v5 = vpack.c.bf16 %v34_v4, %v33_v3  ;;  %v35_v6 = vld [vmem:[%s341_s2] sm:$0xff]  ;;  %s173_s7 = sshll.u32 %s275_s6, 4  ;;  %s174_s7 = int_to_ptr.vmem [resolvable:$true] %s173_s7 }
  0x16   :  { %38 = vperm.xlu0 %207, %v35_v6   ;;  %v32_v7 = vld [vmem:[%s340_s1] sm:$0xff]  ;;  %p247_p9 = scmp.lt.s32.totalorder %s174_s7, %s174_s7 }
  0x17   :  { %198 = vmatpush3.bf16.xpose.msk.msra.mxu0 %vm197_vm2, %v196_v5  ;;  %v152_v41 = vld [vmem:[%s342_s3] sm:$0xf]  ;;  %s242_s3 = scalar_lea.vmem %s174_s7, 64 }
  0x18   :  { %p243_p8 = scmp.ne.s32.totalorder %s174_s7, %s242_s3  ;;  %p248_p10 = scmp.lt.s32.totalorder %s242_s3, %s242_s3 }
  0x1a   :  { %p249_p11 = por %p248_p10, %p247_p9 }
  0x1c   :  { %p250_p12 = pnand %p249_p11, %p243_p8 }
  0x1e   :  { %193 = vmatmul.mubr.msk.f32.vlgmr.msra.gmra.mrb[0].mxu0 %vm41_vm1, %v32_v7 }
  0x95   :  { %v39_v8 = vpop.permute.xlu0 %38 }
  0xf1   :  { %v117_v9 = vpop.f32.mrb[0].mxu0 }
  0xf2   :  { %v118_v10 = vadd.f32 %v117_v9, %v39_v8  ;;  %v194_v11 = vpop.f32.mrb[1].mxu0 }
  0xf4   :  { %v122_v12 = vsel %vm121_vm3, %v118_v10, -inf }
  0xf5   :  { %v123_v13 = vrot.slane %v122_v12, 4 }
  0xf7   :  { %v124_v14 = vmax.f32 %v122_v12, %v123_v13 }
  0xf9   :  { %v125_v15 = vrot.slane %v124_v14, 2 }
  0xfb   :  { %v126_v16 = vmax.f32 %v124_v14, %v125_v15 }
  0xfd   :  { %v127_v17 = vrot.slane %v126_v16, 1 }
  0xff   :  { %v128_v18 = vmax.f32 %v126_v16, %v127_v17 }
 0x101   :  { %v129_v19 = vsub.f32 %v118_v10, %v128_v18 }
 0x103   :  { %v130_v20 = vmul.f32 1.442695, %v129_v19 }
 0x105   :  { %208 = vpow2.f32 %v130_v20 }
 0x10f   :  { %v209_v21 = vpop.eup %208 }
 0x110   :  { %v132_v22 = vsel %vm121_vm3, %v209_v21, 0.0 }
 0x111   :  { %v133_v23 = vrot.slane %v132_v22, 4 }
 0x113   :  { %v134_v24 = vadd.f32 %v133_v23, %v132_v22 }
 0x115   :  { %v135_v25 = vrot.slane %v134_v24, 2 }
 0x117   :  { %v136_v26 = vadd.f32 %v135_v25, %v134_v24 }
 0x119   :  { %v137_v27 = vrot.slane %v136_v26, 1 }
 0x11b   :  { %v138_v28 = vadd.f32 %v137_v27, %v136_v26 }
 0x11d   :  { %210 = vrcp.f32 %v138_v28 }
 0x127   :  { %v211_v29 = vpop.eup %210 }
 0x128   :  { %v140_v30 = vmul.f32 %v211_v29, %v209_v21 }
 0x12a   :  { %v141_v31 = vmul.f32 1.442695, %v140_v30 }
 0x12c   :  { %212 = vpow2.f32 %v141_v31 }
 0x136   :  { %v213_v32 = vpop.eup %212 }
 0x137   :  { %v143_v33 = vsel %vm121_vm3, %v213_v32, 0.0 }
 0x138   :  { %v144_v34 = vrot.slane %v143_v33, 4 }
 0x13a   :  { %v145_v35 = vadd.f32 %v144_v34, %v143_v33 }
 0x13c   :  { %v146_v36 = vrot.slane %v145_v35, 2 }
 0x13e   :  { %v147_v37 = vadd.f32 %v146_v36, %v145_v35 }
 0x140   :  { %v148_v38 = vrot.slane %v147_v37, 1 }
 0x142   :  { %v149_v39 = vadd.f32 %v148_v38, %v147_v37 }
 0x144   :  { %214 = vrcp.f32 %v149_v39 }
 0x14e   :  { %v215_v40 = vpop.eup %214 }
 0x14f   :  { %v151_v42 = vmul.f32 %v215_v40, %v213_v32 }
 0x151   :  { %v153_v43 = vadd.f32 %v152_v41, %v151_v42 }
 0x153   :  { %v154_v44 = vmul.f32 2.0, %v153_v43 }
 0x155   :  { %v155_v45 = vmul.f32 1.442695, %v154_v44 }
 0x157   :  { %216 = vpow2.f32 %v155_v45 }
 0x161   :  { %v217_v46 = vpop.eup %216 }
 0x162   :  { %v157_v47 = vsel %vm121_vm3, %v217_v46, 0.0 }
 0x163   :  { %v158_v48 = vrot.slane %v157_v47, 4 }
 0x165   :  { %v159_v49 = vadd.f32 %v158_v48, %v157_v47 }
 0x167   :  { %v160_v50 = vrot.slane %v159_v49, 2 }
 0x169   :  { %v161_v51 = vadd.f32 %v160_v50, %v159_v49 }
 0x16b   :  { %v162_v52 = vrot.slane %v161_v51, 1 }
 0x16d   :  { %v163_v53 = vadd.f32 %v162_v52, %v161_v51 }
 0x16f   :  { %218 = vrcp.f32 %v163_v53 }
 0x179   :  { %v219_v54 = vpop.eup %218 }
 0x17a   :  { %v165_v55 = vmul.f32 %v219_v54, %v217_v46 }
 0x17c   :  { %166 = vst.msk [vmem:[#allocation5] sm:$0xf] %vm121_vm3, %v165_v55 }
 0x17d   :  { %253 = shalt.err (!%p250_p12)
}
 0x17e   :  { %s254_s10 = scalar_lea.hbm %s343_s4, 64 }
 0x17f   :  { %p255_p13 = scmp.ne.s32.totalorder %s343_s4, %s254_s10  ;;  %p258_p0 = scmp.lt.u32.totalorder %s254_s10, %s343_s4 }
 0x181   :  { %p260_p1 = pnand %p258_p0, %p255_p13 }
 0x183   :  { %263 = shalt.err (!%p260_p1)
}
 0x184   :  { %176 = dma.vmem_to_hbm [thread:$0]  %s174_s7, 64, %s343_s4, [#allocation4]  }
 0x185   :  { %266 = dma.done.wait [#allocation4], 64  }
 0x186   :  { %267 = vsyncadd [#allocation4], 4294967232 }
 0x187   :  { %180 = vsyncpa [#allocation3], 1 }
 0x188   :  { %181 = vsyncpa [#allocation4], 1 }

</bundles_post_ra>
